<compile_context>
chip_gen: v7x
topology: tpu7x:2x2x1
jax: 0.10.0
libtpu: 0.0.40
codegen_flags: <defaults>
</compile_context>

<pallas_src>
import functools

import jax
import jax.numpy as jnp
from jax.experimental import pallas as pl
from jax.experimental.pallas import tpu as pltpu

LANE = 128  # TPU vreg lane width.


def _round_up(x, m):
    return ((x + m - 1) // m) * m


def _iou_partial_kernel(pred_ref, target_ref, out_ref, acc_ref, *, eps):
    """One (4, TILE_R, 128) tile of boxes -> running partial IoU sum.

    pred_ref / target_ref: (4, TILE_R, LANE) f32 blocks in VMEM.
    out_ref:               (1, 8, LANE) f32 per-split partial-sum slab.
    acc_ref:               (8, LANE) f32 VMEM scratch accumulator.
    """
    t_idx = pl.program_id(1)

    @pl.when(t_idx == 0)
    def _init():
        acc_ref[...] = jnp.zeros_like(acc_ref)

    p = pred_ref[...]      # (4, TILE_R, LANE)
    t = target_ref[...]

    px1, py1, px2, py2 = p[0], p[1], p[2], p[3]   # dense (TILE_R, LANE) slabs
    tx1, ty1, tx2, ty2 = t[0], t[1], t[2], t[3]

    # Intersection rectangle.
    iw = jnp.maximum(jnp.minimum(px2, tx2) - jnp.maximum(px1, tx1), 0.0)
    ih = jnp.maximum(jnp.minimum(py2, ty2) - jnp.maximum(py1, ty1), 0.0)
    inter = iw * ih

    area_p = (px2 - px1) * (py2 - py1)
    area_t = (tx2 - tx1) * (ty2 - ty1)
    union = area_p + area_t - inter + eps

    # Exact divide keeps bit-level agreement with the reference
    # (pl.reciprocal(approx=True) would be free on EUP but ~1e-3 off).
    iou = inter / union    # (TILE_R, LANE); zero-padded boxes -> 0/eps = 0

    # Reduce sublane-groups with cheap VPU adds into the (8, LANE) accumulator;
    # the final tiny reduce happens in the wrapper.
    tile_r = iou.shape[0]
    acc_ref[...] += jnp.sum(iou.reshape(tile_r // 8, 8, LANE), axis=0)

    @pl.when(t_idx == pl.num_programs(1) - 1)
    def _finalize():
        out_ref[...] = acc_ref[...].reshape(1, 8, LANE)


def iou_loss(pred_box, target_box, eps=1e-6, *, tile_rows=512, num_splits=2):
    """pred_box, target_box: (N, 4) float arrays (x1, y1, x2, y2) -> scalar loss."""
    assert pred_box.shape == target_box.shape
    assert pred_box.shape[-1] == 4
    n = pred_box.shape[0]

    tile_rows = max(_round_up(int(tile_rows), 8), 8)
    num_splits = max(int(num_splits), 1)

    # Rows of 128 boxes each; tile the row axis.
    rows_needed = max(pl.cdiv(n, LANE), 1)
    tile_r = min(tile_rows, _round_up(rows_needed, 8))
    tiles_total = pl.cdiv(rows_needed, tile_r)
    tiles_per_split = pl.cdiv(tiles_total, num_splits)
    padded_rows = num_splits * tiles_per_split * tile_r
    padded_n = padded_rows * LANE

    def to_kernel_layout(x):
        x = x.astype(jnp.float32)
        # Zero boxes: inter = 0, union = eps, iou = 0 -> do not affect the sum.
        x = jnp.pad(x, ((0, padded_n - n), (0, 0)))
        # TODO(synk): this (N,4)->(4,N) transpose is one extra HBM pass; have the
        # producer emit coordinate-major boxes to drop it entirely.
        x = jnp.transpose(x, (1, 0))
        return jnp.reshape(x, (4, padded_rows, LANE))   # free reshape

    pred_t = to_kernel_layout(pred_box)
    target_t = to_kernel_layout(target_box)

    in_index_map = lambda c, t: (0, c * tiles_per_split + t, 0)

    partials = pl.pallas_call(
        functools.partial(_iou_partial_kernel, eps=eps),
        out_shape=jax.ShapeDtypeStruct((num_splits, 8, LANE), jnp.float32),
        grid_spec=pltpu.PrefetchScalarGridSpec(
            num_scalar_prefetch=0,
            grid=(num_splits, tiles_per_split),
            in_specs=[
                pl.BlockSpec((4, tile_r, LANE), in_index_map),
                pl.BlockSpec((4, tile_r, LANE), in_index_map),
            ],
            out_specs=pl.BlockSpec((1, 8, LANE), lambda c, t: (c, 0, 0)),
            scratch_shapes=[pltpu.VMEM((8, LANE), jnp.float32)],
        ),
        compiler_params=pltpu.CompilerParams(
            dimension_semantics=("parallel", "arbitrary"),
            vmem_limit_bytes=32 * 1024 * 1024,
        ),
    )(pred_t, target_t)

    # Combine per-split lane-dense partial sums; divide by the TRUE N.
    return 1.0 - jnp.sum(partials) / jnp.float32(n)


def _iou_loss_ref(pred_box, target_box, eps=1e-6):
    """Pure-JAX reference for verification."""
    px1, py1, px2, py2 = [pred_box[:, i] for i in range(4)]
    tx1, ty1, tx2, ty2 = [target_box[:, i] for i in range(4)]
    iw = jnp.maximum(jnp.minimum(px2, tx2) - jnp.maximum(px1, tx1), 0.0)
    ih = jnp.maximum(jnp.minimum(py2, ty2) - jnp.maximum(py1, ty1), 0.0)
    inter = iw * ih
    union = (px2 - px1) * (py2 - py1) + (tx2 - tx1) * (ty2 - ty1) - inter + eps
    return 1.0 - jnp.mean(inter / union)


if __name__ == "__main__":
    keys = jax.random.split(jax.random.PRNGKey(0), 8)

    def make_boxes(kxy, kwh, n):
        xy = jax.random.uniform(kxy, (n, 2), minval=0.0, maxval=8.0)
        wh = jax.random.uniform(kwh, (n, 2), minval=1.0, maxval=6.0)
        return jnp.concatenate([xy, xy + wh], axis=-1).astype(jnp.float32)

    # Small shape consistent with the module: (N, 4) box pairs.
    N = 8
    pred_box = make_boxes(keys[0], keys[1], N)
    target_box = make_boxes(keys[2], keys[3], N)

    loss = iou_loss(pred_box, target_box)
    jax.block_until_ready(loss)
    ref = _iou_loss_ref(pred_box, target_box)
    assert jnp.allclose(loss, ref, atol=1e-5, rtol=1e-5), (loss, ref)

    # Exercise the multi-tile accumulator / grid path with a small tile size.
    N2 = 4096
    pred2 = make_boxes(keys[4], keys[5], N2)
    target2 = make_boxes(keys[6], keys[7], N2)
    loss2 = iou_loss(pred2, target2, tile_rows=8)
    jax.block_until_ready(loss2)
    ref2 = _iou_loss_ref(pred2, target2)
    assert jnp.allclose(loss2, ref2, atol=1e-4, rtol=1e-4), (loss2, ref2)

    print("KERNEL_OK")
</pallas_src>

<mosaic_0001>
module attributes {stable_mosaic.version = 11 : i64} {
  func.func @_iou_partial_kernel(%arg0: i32, %arg1: i32, %arg2: memref<4x8x128xf32, #tpu.memory_space<vmem>>, %arg3: memref<4x8x128xf32, #tpu.memory_space<vmem>>, %arg4: memref<1x8x128xf32, #tpu.memory_space<vmem>>, %arg5: memref<8x128xf32, #tpu.memory_space<vmem>>) attributes {dimension_semantics = [#tpu.dimension_semantics<parallel>, #tpu.dimension_semantics<arbitrary>], iteration_bounds = array<i64: 2, 1>, scalar_prefetch = 0 : i64, scratch_operands = 1 : i64, tpu.core_type = #tpu.core_type<tc>, window_params = [{transform_indices = @transform_0, window_bounds = array<i64: 4, 8, 128>}, {transform_indices = @transform_1, window_bounds = array<i64: 4, 8, 128>}, {transform_indices = @transform_2, window_bounds = array<i64: 1, 8, 128>}]} {
    %c0_i32 = arith.constant 0 : i32
    %0 = arith.cmpi eq, %arg1, %c0_i32 : i32
    %1 = arith.extui %0 : i1 to i32
    %c0_i32_0 = arith.constant 0 : i32
    %2 = arith.cmpi ne, %1, %c0_i32_0 : i32
    scf.if %2 {
      %cst_15 = arith.constant 0.000000e+00 : f32
      %51 = vector.broadcast %cst_15 : f32 to vector<8x128xf32>
      %c0_16 = arith.constant 0 : index
      %c0_17 = arith.constant 0 : index
      %52 = vector.load %arg5[%c0_16, %c0_17] : memref<8x128xf32, #tpu.memory_space<vmem>>, vector<8x128xf32>
      tpu.vector_store %arg5[%c0_16, %c0_17], %51 {strides = array<i32>} : memref<8x128xf32, #tpu.memory_space<vmem>>, vector<8x128xf32>,
    } else {
    }
    %c0 = arith.constant 0 : index
    %c0_1 = arith.constant 0 : index
    %c0_2 = arith.constant 0 : index
    %3 = vector.load %arg2[%c0, %c0_1, %c0_2] : memref<4x8x128xf32, #tpu.memory_space<vmem>>, vector<4x8x128xf32>
    %c0_3 = arith.constant 0 : index
    %c0_4 = arith.constant 0 : index
    %c0_5 = arith.constant 0 : index
    %4 = vector.load %arg3[%c0_3, %c0_4, %c0_5] : memref<4x8x128xf32, #tpu.memory_space<vmem>>, vector<4x8x128xf32>
    %5 = vector.extract_strided_slice %3 {offsets = [0, 0, 0], sizes = [1, 8, 128], strides = [1, 1, 1]} : vector<4x8x128xf32> to vector<1x8x128xf32>
    %6 = vector.shape_cast %5 : vector<1x8x128xf32> to vector<8x128xf32>
    %7 = vector.extract_strided_slice %3 {offsets = [1, 0, 0], sizes = [1, 8, 128], strides = [1, 1, 1]} : vector<4x8x128xf32> to vector<1x8x128xf32>
    %8 = vector.shape_cast %7 : vector<1x8x128xf32> to vector<8x128xf32>
    %9 = vector.extract_strided_slice %3 {offsets = [2, 0, 0], sizes = [1, 8, 128], strides = [1, 1, 1]} : vector<4x8x128xf32> to vector<1x8x128xf32>
    %10 = vector.shape_cast %9 : vector<1x8x128xf32> to vector<8x128xf32>
    %11 = vector.extract_strided_slice %3 {offsets = [3, 0, 0], sizes = [1, 8, 128], strides = [1, 1, 1]} : vector<4x8x128xf32> to vector<1x8x128xf32>
    %12 = vector.shape_cast %11 : vector<1x8x128xf32> to vector<8x128xf32>
    %13 = vector.extract_strided_slice %4 {offsets = [0, 0, 0], sizes = [1, 8, 128], strides = [1, 1, 1]} : vector<4x8x128xf32> to vector<1x8x128xf32>
    %14 = vector.shape_cast %13 : vector<1x8x128xf32> to vector<8x128xf32>
    %15 = vector.extract_strided_slice %4 {offsets = [1, 0, 0], sizes = [1, 8, 128], strides = [1, 1, 1]} : vector<4x8x128xf32> to vector<1x8x128xf32>
    %16 = vector.shape_cast %15 : vector<1x8x128xf32> to vector<8x128xf32>
    %17 = vector.extract_strided_slice %4 {offsets = [2, 0, 0], sizes = [1, 8, 128], strides = [1, 1, 1]} : vector<4x8x128xf32> to vector<1x8x128xf32>
    %18 = vector.shape_cast %17 : vector<1x8x128xf32> to vector<8x128xf32>
    %19 = vector.extract_strided_slice %4 {offsets = [3, 0, 0], sizes = [1, 8, 128], strides = [1, 1, 1]} : vector<4x8x128xf32> to vector<1x8x128xf32>
    %20 = vector.shape_cast %19 : vector<1x8x128xf32> to vector<8x128xf32>
    %21 = arith.minimumf %10, %18 : vector<8x128xf32>
    %22 = arith.maximumf %6, %14 : vector<8x128xf32>
    %23 = arith.subf %21, %22 : vector<8x128xf32>
    %cst = arith.constant 0.000000e+00 : f32
    %24 = vector.broadcast %cst : f32 to vector<8x128xf32>
    %25 = arith.maximumf %23, %24 : vector<8x128xf32>
    %26 = arith.minimumf %12, %20 : vector<8x128xf32>
    %27 = arith.maximumf %8, %16 : vector<8x128xf32>
    %28 = arith.subf %26, %27 : vector<8x128xf32>
    %cst_6 = arith.constant 0.000000e+00 : f32
    %29 = vector.broadcast %cst_6 : f32 to vector<8x128xf32>
    %30 = arith.maximumf %28, %29 : vector<8x128xf32>
    %31 = arith.mulf %25, %30 : vector<8x128xf32>
    %32 = arith.subf %10, %6 : vector<8x128xf32>
    %33 = arith.subf %12, %8 : vector<8x128xf32>
    %34 = arith.mulf %32, %33 : vector<8x128xf32>
    %35 = arith.subf %18, %14 : vector<8x128xf32>
    %36 = arith.subf %20, %16 : vector<8x128xf32>
    %37 = arith.mulf %35, %36 : vector<8x128xf32>
    %38 = arith.addf %34, %37 : vector<8x128xf32>
    %39 = arith.subf %38, %31 : vector<8x128xf32>
    %cst_7 = arith.constant 9.99999997E-7 : f32
    %40 = vector.broadcast %cst_7 : f32 to vector<8x128xf32>
    %41 = arith.addf %39, %40 : vector<8x128xf32>
    %42 = arith.divf %31, %41 : vector<8x128xf32>
    %c0_8 = arith.constant 0 : index
    %c0_9 = arith.constant 0 : index
    %43 = vector.load %arg5[%c0_8, %c0_9] : memref<8x128xf32, #tpu.memory_space<vmem>>, vector<8x128xf32>
    %44 = vector.shape_cast %42 : vector<8x128xf32> to vector<1x8x128xf32>
    %cst_10 = arith.constant dense<0.000000e+00> : vector<8x128xf32>
    %45 = vector.multi_reduction <add>, %44, %cst_10 [0] : vector<1x8x128xf32> to vector<8x128xf32>
    %46 = arith.addf %43, %45 : vector<8x128xf32>
    %c0_11 = arith.constant 0 : index
    %c0_12 = arith.constant 0 : index
    %47 = vector.load %arg5[%c0_11, %c0_12] : memref<8x128xf32, #tpu.memory_space<vmem>>, vector<8x128xf32>
    tpu.vector_store %arg5[%c0_11, %c0_12], %46 {strides = array<i32>} : memref<8x128xf32, #tpu.memory_space<vmem>>, vector<8x128xf32>,
    %c0_i32_13 = arith.constant 0 : i32
    %48 = arith.cmpi eq, %arg1, %c0_i32_13 : i32
    %49 = arith.extui %48 : i1 to i32
    %c0_i32_14 = arith.constant 0 : i32
    %50 = arith.cmpi ne, %49, %c0_i32_14 : i32
    scf.if %50 {
      %c0_15 = arith.constant 0 : index
      %c0_16 = arith.constant 0 : index
      %51 = vector.load %arg5[%c0_15, %c0_16] : memref<8x128xf32, #tpu.memory_space<vmem>>, vector<8x128xf32>
      %52 = vector.shape_cast %51 : vector<8x128xf32> to vector<1x8x128xf32>
      %c0_17 = arith.constant 0 : index
      %c0_18 = arith.constant 0 : index
      %c0_19 = arith.constant 0 : index
      %53 = vector.load %arg4[%c0_17, %c0_18, %c0_19] : memref<1x8x128xf32, #tpu.memory_space<vmem>>, vector<1x8x128xf32>
      tpu.vector_store %arg4[%c0_17, %c0_18, %c0_19], %52 {strides = array<i32>} : memref<1x8x128xf32, #tpu.memory_space<vmem>>, vector<1x8x128xf32>,
    } else {
    }
    return
  }
  func.func @transform_0(%arg0: i32, %arg1: i32) -> (i32, i32, i32) {
    %c1_i32 = arith.constant 1 : i32
    %0 = arith.muli %arg0, %c1_i32 : i32
    %1 = arith.addi %0, %arg1 : i32
    %c0_i32 = arith.constant 0 : i32
    %c0_i32_0 = arith.constant 0 : i32
    %c0_i32_1 = arith.constant 0 : i32
    return %c0_i32, %1, %c0_i32_0 : i32, i32, i32
  }
  func.func @transform_1(%arg0: i32, %arg1: i32) -> (i32, i32, i32) {
    %c1_i32 = arith.constant 1 : i32
    %0 = arith.muli %arg0, %c1_i32 : i32
    %1 = arith.addi %0, %arg1 : i32
    %c0_i32 = arith.constant 0 : i32
    %c0_i32_0 = arith.constant 0 : i32
    %c0_i32_1 = arith.constant 0 : i32
    return %c0_i32, %1, %c0_i32_0 : i32, i32, i32
  }
  func.func @transform_2(%arg0: i32, %arg1: i32) -> (i32, i32, i32) {
    %c0_i32 = arith.constant 0 : i32
    %c0_i32_0 = arith.constant 0 : i32
    %c0_i32_1 = arith.constant 0 : i32
    return %arg0, %c0_i32, %c0_i32_0 : i32, i32, i32
  }
}

</mosaic_0001>

<bundles_post_ra>
// kernel: tpu_custom_call.1
= control target key start
LH: loop header
LB: loop body
LE: loop exit
PB: predicated region body
PF: predicated region fallthrough
CT: control target
= control target key end

     0   :  { %7 = vsyncpa [#allocation4], 0  ;;  %s869_s0 = inlined_call_operand.hbm [shape: f32[4,16,128], index: 0, kind: input, shape index: {}]   ;;  %s870_s1 = inlined_call_operand.hbm [shape: f32[4,16,128], index: 1, kind: input, shape index: {}]   ;;  %s871_s2 = inlined_call_operand.hbm [shape: f32[2,8,128], index: 2, kind: output, shape index: {}]  }
   0x1   :  { %9 = vsyncpa [#allocation4 + $0x1], 0 }
   0x2   :  { %10 = vsyncpa [#allocation7], 0 }
   0x3   :  { %12 = vsyncpa [#allocation7 + $0x1], 0 }
   0x4   :  { %13 = vsyncpa [#allocation5], 0 }
   0x5   :  { %15 = vsyncpa [#allocation5 + $0x1], 0  ;;  %s636_s9 = smov 0   ;;  %s638_s10 = smov 0  }
   0x6   :  { %s640_s11 = smov 0   ;;  %s642_s12 = smov 0  }
   0x7   :  { %s644_s13 = smov 0   ;;  %s646_s14 = smov 0  }
   0x8 LB: > { %s379_s15 = sadd.s32 4294967295, %s613_s14   ;;  %s380_s16 = sadd.s32 4294967294, %s613_s14   ;;  %s613_s14 = sphi %s646_s14, %s21_s14   ;;  %s609_s13 = sphi %s644_s13, %s888_s13   ;;  %s605_s12 = sphi %s642_s12, %s887_s12   ;;  %s601_s11 = sphi %s640_s11, %s886_s11   ;;  %s597_s10 = sphi %s638_s10, %s885_s10   ;;  %s593_s9 = sphi %s636_s9, %s884_s9  }
   0x9   : > { %s33_s17 = sadd.s32 1, %s609_s13  ;;  %s42_s18 = sadd.s32 1, %s601_s11 }
   0xa   : > { %p35_p0 = scmp.ge.s32.totalorder %s33_s17, 2  ;;  %p49_p1 = scmp.ne.s32.totalorder %s601_s11, %s597_s10 }
   0xb   : > { %p50_p2 = scmp.eq.s32.totalorder %s613_s14, 0  ;;  %p55_p3 = scmp.ne.s32.totalorder %s597_s10, %s593_s9 }
   0xc   : > { %s890_s17 = smov (%p35_p0, %s33_s17), 0  ;;  %p56_p5 = scmp.eq.s32.totalorder %s379_s15, 0 }
   0xd   : > { %p677_p4 = por %p50_p2, %p49_p1  ;;  %s39_s20 = ssub.s32 %s609_s13, %s890_s17 }
   0xe   : > { %p107_p6 = scmp.eq.s32.totalorder %s379_s15, 1  ;;  %p40_p7 = scmp.eq.s32.totalorder %s39_s20, 0 }
   0xf   : > { %p683_p8 = por %p56_p5, %p55_p3  ;;  %p113_p10 = scmp.eq.s32.totalorder %s380_s16, 1 }
  0x10   : > { %p687_p9 = por %p107_p6, %p49_p1  ;;  %p412_p13 = scmp.lt.s32.totalorder %s613_s14, 2 }
  0x11   : > { %s875_s21 = scalar_select %p683_p8, 1, 0 }
  0x12   : > { %s876_s22 = scalar_select %p687_p9, 1, 0 }
  0x13   : > { %s692_s23 = scalar_select %p40_p7, %s601_s11, %s42_s18  }
  0x14   : > { %p694_p11 = por %p113_p10, %p55_p3  ;;  %s701_s25 = sand.u32 1, %s601_s11  }
  0x15   : > { %s383_s26 = sshll.u32 %s701_s25, 5  ;;  %s384_s27 = sshll.u32 %s609_s13, 7 }
  0x16   : > { %s877_s24 = scalar_select %p694_p11, 1, 0 }
  0x17   : > { %s710_s30 = scalar_lea.hbm %s869_s0, %s384_s27  ;;  %s137_s3 = scalar_lea.vmem [#allocation3], %s383_s26 }
  0x18   : > { %s144_s4 = sshll.u32 %s137_s3, 4  ;;  %p718_p0 = pnand %p412_p13, %p677_p4  ;;  %s714_s4 = int_to_ptr.vmem [resolvable:$true] %s144_s4 }
  0x19   : > { %s134_s6 = scalar_lea.sflag [#allocation4], %s701_s25  ;;  %s467_s7 = scalar_lea.hbm %s710_s30, 512 }
  0x1a   : > { %p468_p1 = scmp.ne.s32.totalorder %s710_s30, %s467_s7  ;;  %p469_p2 = pneg %p718_p0 }
  0x1b   : > { %s472_s16 = scalar_lea.hbm %s869_s0, 1024  ;;  %p473_p4 = scmp.lt.u32.totalorder %s710_s30, %s869_s0 }
  0x1c   : > { %p470_p3 = pnand %p469_p2, %p468_p1  ;;  %p474_p6 = scmp.lt.u32.totalorder %s472_s16, %s467_s7 }
  0x1d   : > { %p476_p10 = scmp.lt.u32.totalorder %s467_s7, %s710_s30 }
  0x1e   : > { %p471_p5 = pneg %p470_p3  ;;  %p475_p7 = por %p474_p6, %p473_p4 }
  0x20   : > { %p477_p13 = por %p476_p10, %p475_p7 }
  0x22   : > { %p478_p12 = pnand %p477_p13, %p471_p5 }
  0x24   : > { %481 = shalt.err (!%p478_p12)
}
  0x25   : > { %s482_s20 = scalar_lea.vmem %s714_s4, 512  ;;  %s615_s28 = smov [#allocation3]  }
  0x26   : > { %p483_p1 = scmp.ne.s32.totalorder %s714_s4, %s482_s20  ;;  %s487_s29 = sshll.u32 %s615_s28, 4  ;;  %s488_s29 = int_to_ptr.vmem [resolvable:$false] %s487_s29 }
  0x27   : > { %s489_s3 = scalar_lea.vmem %s488_s29, 1024  ;;  %p490_p9 = scmp.lt.s32.totalorder %s714_s4, %s488_s29 }
  0x28   : > { %p485_p3 = pnand %p483_p1, %p469_p2  ;;  %p491_p4 = scmp.lt.s32.totalorder %s489_s3, %s482_s20 }
  0x2a   : > { %p486_p11 = pneg %p485_p3  ;;  %p492_p6 = por %p491_p4, %p490_p9 }
  0x2c   : > { %p493_p7 = pnand %p492_p6, %p486_p11 }
  0x2e   : > { %496 = shalt.err (!%p493_p7)
}
  0x2f   : > { %s616_s7 = smov 256   ;;  %s617_s8 = smov 128  }
  0x30   : > { %s618_s15 = smov 8   ;;  %p387_p9 = scmp.ge.s32.totalorder %s613_s14, 1 }
  0x31   : > { %404 = dma.hbm_to_vmem [thread:$0]  (!%p718_p0), %s710_s30, 512, %s714_s4, %s134_s6, %s616_s7, %s617_s8, %s618_s15  }
  0x32   : > { %p173_p11 = scmp.lt.s32.totalorder %s613_s14, 3  ;;  %s764_s20 = scalar_lea.hbm %s870_s1, %s384_s27 }
  0x33   : > { %s158_s28 = scalar_lea.vmem [#allocation6], %s383_s26  ;;  %s155_s30 = scalar_lea.sflag [#allocation7], %s701_s25 }
  0x34   : > { %p755_p12 = pnand %p387_p9, %p173_p11  ;;  %s165_s29 = sshll.u32 %s158_s28, 4  ;;  %s768_s29 = int_to_ptr.vmem [resolvable:$true] %s165_s29 }
  0x35   : > { %s497_s4 = scalar_lea.hbm %s764_s20, 512  ;;  %s502_s27 = scalar_lea.hbm %s870_s1, 1024 }
  0x36   : > { %p498_p5 = scmp.ne.s32.totalorder %s764_s20, %s497_s4  ;;  %p503_p1 = scmp.lt.u32.totalorder %s764_s20, %s870_s1 }
  0x37   : > { %p504_p3 = scmp.lt.u32.totalorder %s502_s27, %s497_s4  ;;  %p506_p6 = scmp.lt.u32.totalorder %s497_s4, %s764_s20 }
  0x38   : > { %p500_p10 = pnand %p498_p5, %p469_p2 }
  0x39   : > { %p505_p4 = por %p504_p3, %p503_p1 }
  0x3a   : > { %p501_p13 = pneg %p500_p10 }
  0x3b   : > { %p507_p7 = por %p506_p6, %p505_p4 }
  0x3d   : > { %p508_p9 = pnand %p507_p7, %p501_p13 }
  0x3f   : > { %511 = shalt.err (!%p508_p9)
}
  0x40   : > { %s512_s26 = scalar_lea.vmem %s768_s29, 512  ;;  %s619_s28 = smov [#allocation6]  }
  0x41   : > { %p513_p11 = scmp.ne.s32.totalorder %s768_s29, %s512_s26  ;;  %s517_s6 = sshll.u32 %s619_s28, 4  ;;  %s518_s6 = int_to_ptr.vmem [resolvable:$false] %s517_s6 }
  0x42   : > { %s519_s3 = scalar_lea.vmem %s518_s6, 1024  ;;  %p520_p8 = scmp.lt.s32.totalorder %s768_s29, %s518_s6 }
  0x43   : > { %p515_p5 = pnand %p513_p11, %p469_p2  ;;  %p521_p1 = scmp.lt.s32.totalorder %s519_s3, %s512_s26 }
  0x45   : > { %p516_p10 = pneg %p515_p5  ;;  %p522_p3 = por %p521_p1, %p520_p8 }
  0x47   : > { %p523_p4 = pnand %p522_p3, %p516_p10 }
  0x49   : > { %526 = shalt.err (!%p523_p4)
}
  0x4a   : > { %407 = dma.hbm_to_vmem [thread:$0]  (!%p718_p0), %s764_s20, 512, %s768_s29, %s155_s30, %s616_s7, %s617_s8, %s618_s15  }
  0x4b   : > { %177 = sbr.rel (%p755_p12) target bundleno = 127 (0x7f), region = 28  ;;  %s802_s4 = sand.u32 (!%p755_p12), 1, %s597_s10  }
  0x4c   : > { %s388_s27 = sshll.u32 (!%p755_p12), %s802_s4, 5  ;;  %s180_s18 = scalar_lea.sflag (!%p755_p12), [#allocation4], %s802_s4 }
  0x4d   : > { %s183_s5 = scalar_lea.vmem (!%p755_p12), [#allocation3], %s388_s27  ;;  %p880_p8 = scmp.ne.s32.totalorder (!%p755_p12), %s875_s21, 0 }
  0x52   : > { %580 = dma.done.wait (%p880_p8), %s180_s18, 512  }
  0x53   : > { %582 = vsyncadd (%p880_p8), %s180_s18, 4294966784  ;;  %s189_s25 = scalar_lea.sflag [#allocation7], %s802_s4  ;;  %s192_s7 = scalar_lea.vmem [#allocation6], %s388_s27 }
  0x54   : > { %584 = dma.done.wait (%p880_p8), %s189_s25, 512  }
  0x55   : > { %586 = vsyncadd (%p880_p8), %s189_s25, 4294966784  ;;  %v225_v0 = vld [vmem:[%s183_s5] sm:$0xff]  ;;  %v226_v1 = vld [vmem:[%s183_s5 + $0x8] sm:$0xff]  ;;  %s390_s21 = sshll.u32 %s802_s4, 3  ;;  %s392_s16 = sshll.u32 %s605_s12, 7 }
  0x56   : > { %v227_v2 = vld [vmem:[%s183_s5 + $0x10] sm:$0xff]  ;;  %v228_v3 = vld [vmem:[%s183_s5 + $0x18] sm:$0xff]  ;;  %v229_v4 = vld [vmem:[%s192_s7] sm:$0xff]  ;;  %s217_s8 = scalar_lea.vmem [#allocation8], %s390_s21  ;;  %s822_s30 = scalar_lea.hbm %s871_s2, %s392_s16 }
  0x57   : > { %v230_v5 = vld [vmem:[%s192_s7 + $0x8] sm:$0xff]  ;;  %v242_v6 = vsub.f32 %v227_v2, %v225_v0  ;;  %v231_v7 = vld [vmem:[%s192_s7 + $0x10] sm:$0xff]  ;;  %v232_v8 = vld [vmem:[%s192_s7 + $0x18] sm:$0xff]  ;;  %v234_v9 = vmax.f32 %v225_v0, %v229_v4  ;;  %v243_v11 = vsub.f32 %v228_v3, %v226_v1  ;;  %s276_s15 = sshll.u32 %s217_s8, 4  ;;  %s263_s19 = scalar_lea.sflag [#allocation5], %s802_s4  ;;  %s817_s15 = int_to_ptr.vmem [resolvable:$true] %s276_s15 }
  0x58   : > { %v238_v10 = vmax.f32 %v226_v1, %v230_v5  ;;  %v233_v12 = vmin.f32 %v227_v2, %v231_v7  ;;  %v237_v13 = vmin.f32 %v228_v3, %v232_v8  ;;  %v245_v14 = vsub.f32 %v231_v7, %v229_v4  ;;  %s527_s26 = scalar_lea.vmem %s817_s15, 128  ;;  %p881_p2 = scmp.ne.s32.totalorder %s876_s22, 0 }
  0x59   : > { %v246_v15 = vsub.f32 %v232_v8, %v230_v5  ;;  %v244_v16 = vmul.f32 %v243_v11, %v242_v6  ;;  %p528_p0 = scmp.ne.s32.totalorder %s817_s15, %s527_s26  ;;  %s620_s12 = smov [#allocation8]  }
  0x5a   : > { %v235_v17 = vsub.f32 %v233_v12, %v234_v9  ;;  %v239_v18 = vsub.f32 %v237_v13, %v238_v10  ;;  %s531_s28 = sshll.u32 %s620_s12, 4  ;;  %s532_s28 = int_to_ptr.vmem [resolvable:$false] %s531_s28 }
  0x5b   : > { %v247_v19 = vmul.f32 %v246_v15, %v245_v14  ;;  %p529_p12 = pnand %p528_p0, %p881_p2  ;;  %s533_s6 = scalar_lea.vmem %s532_s28, 256 }
  0x5c   : > { %v236_v20 = vmax.f32 %v235_v17, 0.0  ;;  %v240_v21 = vmax.f32 %v239_v18, 0.0  ;;  %p534_p6 = scmp.lt.s32.totalorder %s817_s15, %s532_s28  ;;  %p535_p7 = scmp.lt.s32.totalorder %s533_s6, %s527_s26 }
  0x5d   : > { %v248_v22 = vadd.f32 %v247_v19, %v244_v16  ;;  %p530_p13 = pneg %p529_p12 }
  0x5e   : > { %v241_v23 = vmul.f32 %v240_v21, %v236_v20  ;;  %p536_p9 = por %p535_p7, %p534_p6 }
  0x60   : > { %v249_v24 = vsub.f32 %v248_v22, %v241_v23  ;;  %p537_p11 = pnand %p536_p9, %p530_p13 }
  0x62   : > { %v250_v25 = vadd.f32 1e-06, %v249_v24 }
  0x64   : > { %465 = vrcp.f32 %v250_v25 }
  0x6e   : > { %v466_v26 = vpop.eup %465 }
  0x6f   : > { %v252_v27 = vmul.f32 %v466_v26, %v241_v23 }
  0x71   : > { %261 = vst [vmem:[%s217_s8] sm:$0xff] %v252_v27 }
  0x72   : > { %540 = shalt.err (!%p537_p11)
}
  0x73   : > { %s541_s3 = scalar_lea.hbm %s822_s30, 128  ;;  %s545_s18 = scalar_lea.hbm %s871_s2, 256 }
  0x74   : > { %p542_p5 = scmp.ne.s32.totalorder %s822_s30, %s541_s3  ;;  %p546_p3 = scmp.lt.u32.totalorder %s822_s30, %s871_s2 }
  0x75   : > { %p547_p4 = scmp.lt.u32.totalorder %s545_s18, %s541_s3  ;;  %p549_p0 = scmp.lt.u32.totalorder %s541_s3, %s822_s30 }
  0x76   : > { %p543_p10 = pnand %p542_p5, %p881_p2 }
  0x77   : > { %p548_p8 = por %p547_p4, %p546_p3 }
  0x78   : > { %p544_p1 = pneg %p543_p10 }
  0x79   : > { %p550_p12 = por %p549_p0, %p548_p8 }
  0x7b   : > { %p551_p13 = pnand %p550_p12, %p544_p1 }
  0x7d   : > { %554 = shalt.err (!%p551_p13)
}
  0x7e   : > { %399 = dma.vmem_to_hbm [thread:$0]  (%p881_p2), %s817_s15, 128, %s822_s30, %s263_s19  }
  0x7f PF: > { %s288_s7 = sand.u32 1, %s593_s9   ;;  %p882_p6 = scmp.ne.s32.totalorder %s877_s24, 0 }
  0x80   : > { %p883_p7 = scmp.ge.s32.totalorder %s613_s14, 2  ;;  %s289_s21 = scalar_lea.sflag [#allocation5], %s288_s7 }
  0x82   : > { %p409_p9 = pnand %p883_p7, %p882_p6 }
  0x84   : > { %588 = dma.done.wait (!%p409_p9), %s289_s21, 128  }
  0x85   : > { %590 = vsyncadd (!%p409_p9), %s289_s21, 4294967168  ;;  %s21_s14 = sadd.s32 1, %s613_s14   ;;  %s884_s9 = smov %s597_s10 }
  0x86   : > { %p18_p11 = scmp.ge.s32.totalorder %s21_s14, 4   ;;  %s885_s10 = smov %s601_s11 }
  0x87   : > { %s886_s11 = smov %s692_s23  ;;  %s887_s12 = smov %s609_s13 }
  0x88   : > { %s888_s13 = smov %s890_s17  ;;  %20 = sbr.rel (!%p18_p11) target bundleno = 8 (0x8), region = 94 }
  0x8f   :  { %294 = vsyncpa [#allocation4], 1 }
  0x90   :  { %296 = vsyncpa [#allocation4 + $0x1], 1 }
  0x91   :  { %297 = vsyncpa [#allocation7], 1 }
  0x92   :  { %299 = vsyncpa [#allocation7 + $0x1], 1 }
  0x93   :  { %300 = vsyncpa [#allocation5], 1 }
  0x94   :  { %302 = vsyncpa [#allocation5 + $0x1], 1 }

</bundles_post_ra>
